<compile_context>
chip_gen: v7x
topology: tpu7x:2x2x1
jax: 0.10.0
libtpu: 0.0.40
codegen_flags: <defaults>
</compile_context>

<pallas_src>
import functools

import jax
import jax.numpy as jnp
from jax.experimental import pallas as pl
from jax.experimental.pallas import tpu as pltpu


def _cdiv(a, b):
    return -(-a // b)


def _choose_tiles(B, C, HW, itemsize, target_bytes=4 * 1024 * 1024):
    """Pick (batch_tile, spatial_tile, batch_grid, spatial_grid).

    Spatial tile is a multiple of 128 (or the full extent if HW < 128); the
    ragged edge is handled by a cdiv grid + Pallas masking.  Batch is folded
    into the block when the (C, T) slab is far below target_bytes, while
    keeping at least 2 total grid steps whenever >= 2 are available (v7x
    megacore).
    """
    if HW <= 128:
        T = HW
    else:
        per_col_bytes = max(1, C * itemsize)
        max_cols = max(128, (target_bytes // per_col_bytes) // 128 * 128)
        T = min((HW // 128) * 128, max_cols)
    ns = _cdiv(HW, T)

    blk_bytes = C * T * itemsize
    Bt = 1
    for cand in range(B, 0, -1):
        if B % cand != 0:
            continue
        if cand * blk_bytes > target_bytes:
            continue
        # Keep >= 2 total parallel grid steps when that is achievable.
        if (B // cand) * ns < 2 and B * ns >= 2:
            continue
        Bt = cand
        break
    nb = B // Bt
    return Bt, T, nb, ns


def _spectral_noise_kernel(x_ref, noise_ref, w_ref, o_ref):
    # x_ref/o_ref: (Bt, C, T)   noise_ref: (Bt, 1, T)   w_ref: (C, 1)
    x = x_ref[...]                       # lane-dense (Bt, C, T)
    n = noise_ref[...]                   # broadcasts over sublanes (C)
    w = w_ref[...][None]                 # (1, C, 1) broadcasts over lanes (T)
    o_ref[...] = (x + n * w).astype(o_ref.dtype)


@jax.jit
def _spectral_noise_forward(x, weight, noise):
    B, C, H, W = x.shape
    HW = H * W
    itemsize = jnp.dtype(x.dtype).itemsize
    Bt, T, nb, ns = _choose_tiles(B, C, HW, itemsize)

    x3 = x.reshape(B, C, HW)
    n3 = noise.reshape(B, 1, HW)          # native dtype; cast (if any) in-kernel
    wcol = weight.reshape(C, 1)

    out3 = pl.pallas_call(
        _spectral_noise_kernel,
        out_shape=jax.ShapeDtypeStruct((B, C, HW), x.dtype),
        grid_spec=pltpu.PrefetchScalarGridSpec(
            num_scalar_prefetch=0,
            grid=(nb, ns),
            in_specs=[
                pl.BlockSpec((Bt, C, T), lambda b, s: (b, 0, s)),
                pl.BlockSpec((Bt, 1, T), lambda b, s: (b, 0, s)),
                pl.BlockSpec((C, 1), lambda b, s: (0, 0)),
            ],
            out_specs=pl.BlockSpec((Bt, C, T), lambda b, s: (b, 0, s)),
        ),
        compiler_params=pltpu.CompilerParams(
            dimension_semantics=("parallel", "parallel"),
            vmem_limit_bytes=40 * 1024 * 1024,
        ),
        # x is fully overwritten -> alias it to the output (capacity win).
        input_output_aliases={0: 0},
    )(x3, n3, wcol)

    return out3.reshape(B, C, H, W)


def spectral_noise_layer(x, weight, noise=None, *, key=None):
    """out[b,c,h,w] = x[b,c,h,w] + noise[b,0,h,w] * weight[c].

    If `noise` is None, uniform [0,1) noise of shape (B,1,H,W) and dtype
    x.dtype is drawn from `key` (thread a fresh key per call to mimic
    torch.rand's fresh draw each forward).
    """
    if noise is None:
        if key is None:
            key = jax.random.PRNGKey(0)
        B, _, H, W = x.shape
        noise = jax.random.uniform(key, (B, 1, H, W), dtype=x.dtype)
    return _spectral_noise_forward(x, weight, noise)


if __name__ == "__main__":
    B, C, H, W = 2, 4, 16, 16

    key = jax.random.PRNGKey(0)
    k_x, k_w, k_n, k_s = jax.random.split(key, 4)

    x = jax.random.normal(k_x, (B, C, H, W), dtype=jnp.float32)
    # Deterministic parameter init (the module's own init is zeros, which
    # would make the noise term vanish; use a random weight to exercise it).
    weight = jax.random.normal(k_w, (C,), dtype=jnp.float32)
    noise = jax.random.uniform(k_n, (B, 1, H, W), dtype=jnp.float32)

    # --- path 1: explicit noise, exact check vs pure-JAX reference ---
    out = spectral_noise_layer(x, weight, noise=noise)
    out = jax.block_until_ready(out)
    ref = x + noise * weight.reshape(1, C, 1, 1)
    assert out.shape == (B, C, H, W)
    assert jnp.allclose(out, ref, atol=1e-6), "mismatch vs reference (path 1)"

    # --- path 2: noise generated internally from a key (torch.rand path) ---
    out2 = spectral_noise_layer(x, weight, noise=None, key=k_s)
    out2 = jax.block_until_ready(out2)
    noise2 = jax.random.uniform(k_s, (B, 1, H, W), dtype=x.dtype)
    ref2 = x + noise2 * weight.reshape(1, C, 1, 1)
    assert out2.shape == (B, C, H, W)
    assert bool(jnp.all(jnp.isfinite(out2)))
    assert jnp.allclose(out2, ref2, atol=1e-6), "mismatch vs reference (path 2)"

    print("KERNEL_OK")
</pallas_src>

<mosaic_0001>
module attributes {stable_mosaic.version = 11 : i64} {
  func.func @_spectral_noise_kernel(%arg0: i32, %arg1: i32, %arg2: memref<1x4x256xf32, #tpu.memory_space<vmem>>, %arg3: memref<1x1x256xf32, #tpu.memory_space<vmem>>, %arg4: memref<4x1xf32, #tpu.memory_space<vmem>>, %arg5: memref<1x4x256xf32, #tpu.memory_space<vmem>>) attributes {dimension_semantics = [#tpu.dimension_semantics<parallel>, #tpu.dimension_semantics<parallel>], iteration_bounds = array<i64: 2, 1>, scalar_prefetch = 0 : i64, scratch_operands = 0 : i64, tpu.core_type = #tpu.core_type<tc>, window_params = [{transform_indices = @transform_0, window_bounds = array<i64: 1, 4, 256>}, {transform_indices = @transform_1, window_bounds = array<i64: 1, 1, 256>}, {pipeline_mode = #tpu.pipeline_mode<synchronous>, transform_indices = @transform_2, window_bounds = array<i64: 4, 1>}, {transform_indices = @transform_3, window_bounds = array<i64: 1, 4, 256>}]} {
    %c0 = arith.constant 0 : index
    %c0_0 = arith.constant 0 : index
    %c0_1 = arith.constant 0 : index
    %0 = vector.load %arg2[%c0, %c0_0, %c0_1] : memref<1x4x256xf32, #tpu.memory_space<vmem>>, vector<1x4x256xf32>
    %c0_2 = arith.constant 0 : index
    %c0_3 = arith.constant 0 : index
    %c0_4 = arith.constant 0 : index
    %1 = vector.load %arg3[%c0_2, %c0_3, %c0_4] : memref<1x1x256xf32, #tpu.memory_space<vmem>>, vector<1x1x256xf32>
    %c0_5 = arith.constant 0 : index
    %c0_6 = arith.constant 0 : index
    %2 = vector.load %arg4[%c0_5, %c0_6] : memref<4x1xf32, #tpu.memory_space<vmem>>, vector<4x1xf32>
    %3 = vector.shape_cast %2 : vector<4x1xf32> to vector<1x4x1xf32>
    %4 = vector.broadcast %1 : vector<1x1x256xf32> to vector<1x4x256xf32>
    %5 = vector.broadcast %3 : vector<1x4x1xf32> to vector<1x4x256xf32>
    %6 = arith.mulf %4, %5 : vector<1x4x256xf32>
    %7 = arith.addf %0, %6 : vector<1x4x256xf32>
    %c0_7 = arith.constant 0 : index
    %c0_8 = arith.constant 0 : index
    %c0_9 = arith.constant 0 : index
    %8 = vector.load %arg5[%c0_7, %c0_8, %c0_9] : memref<1x4x256xf32, #tpu.memory_space<vmem>>, vector<1x4x256xf32>
    tpu.vector_store %arg5[%c0_7, %c0_8, %c0_9], %7 {strides = array<i32>} : memref<1x4x256xf32, #tpu.memory_space<vmem>>, vector<1x4x256xf32>,
    return
  }
  func.func @transform_0(%arg0: i32, %arg1: i32) -> (i32, i32, i32) {
    %c0_i32 = arith.constant 0 : i32
    %c0_i32_0 = arith.constant 0 : i32
    return %arg0, %c0_i32, %arg1 : i32, i32, i32
  }
  func.func @transform_1(%arg0: i32, %arg1: i32) -> (i32, i32, i32) {
    %c0_i32 = arith.constant 0 : i32
    %c0_i32_0 = arith.constant 0 : i32
    return %arg0, %c0_i32, %arg1 : i32, i32, i32
  }
  func.func @transform_2(%arg0: i32, %arg1: i32) -> (i32, i32) {
    %c0_i32 = arith.constant 0 : i32
    %c0_i32_0 = arith.constant 0 : i32
    %c0_i32_1 = arith.constant 0 : i32
    return %c0_i32, %c0_i32_0 : i32, i32
  }
  func.func @transform_3(%arg0: i32, %arg1: i32) -> (i32, i32, i32) {
    %c0_i32 = arith.constant 0 : i32
    %c0_i32_0 = arith.constant 0 : i32
    return %arg0, %c0_i32, %arg1 : i32, i32, i32
  }
}

</mosaic_0001>

<bundles_post_ra>
// kernel: _spectral_noise_forward.1
= control target key start
LH: loop header
LB: loop body
LE: loop exit
PB: predicated region body
PF: predicated region fallthrough
CT: control target
= control target key end

     0   :  { %s457_s12 = smov 0   ;;  %s459_s13 = smov 0   ;;  %s496_s0 = inlined_call_operand.vmem [shape: f32[2,4,256], index: 0, kind: input, shape index: {}, may-alias: {0,3}]   ;;  %s497_s1 = inlined_call_operand.vmem [shape: f32[2,1,256], index: 1, kind: input, shape index: {}]   ;;  %s498_s2 = inlined_call_operand.vmem [shape: f32[4,1], index: 2, kind: input, shape index: {}]   ;;  %s499_s3 = inlined_call_operand.vmem [shape: f32[2,4,256], index: 3, kind: output, shape index: {}, may-alias: {0,3}]  }
   0x1   :  { %s461_s14 = smov 0  }
   0x2 LB: > { %s25_s15 = sadd.s32 1, %s430_s13  ;;  %p376_p0 = scmp.ge.s32.totalorder %s434_s14, 1  ;;  %s434_s14 = sphi %s461_s14, %s13_s14   ;;  %s430_s13 = sphi %s459_s13, %s501_s13   ;;  %s426_s12 = sphi %s457_s12, %s500_s12  }
   0x3   : > { %p27_p1 = scmp.ge.s32.totalorder %s25_s15, 2  ;;  %p174_p2 = scmp.lt.s32.totalorder %s434_s14, 3 }
   0x5   : > { %s503_s15 = smov (%p27_p1, %s25_s15), 0  ;;  %p175_p3 = pnand %p376_p0, %p174_p2 }
   0x6   : > { %v245_v0 = vld [vmem:[%s498_s2] sm:$0xf] (!%p175_p3)  ;;  %v436_v1 = vmov (!%p175_p3), 0   ;;  %p215_p4 = scmp.lt.s32.totalorder (!%p175_p3), %s426_s12, 1  ;;  %v247_v2 = vlaneseq (!%p175_p3) }
   0x7   : > { %178 = sbr.rel (%p175_p3) target bundleno = 143 (0x8f), region = 32  ;;  %411 = vset.pattern.permute.xlu0 (!%p175_p3), %v436_v1 }
   0x8   : > { %259 = vperm.xlu0 (!%p175_p3), %411, %v245_v0   ;;  %v248_v3 = vshrl.u32 (!%p175_p3), %v247_v2, 7 }
   0xa   : > { %v249_v4 = vsub.s32 (!%p175_p3), 0, %v248_v3  ;;  %v253_v5 = vsub.s32 (!%p175_p3), 1, %v248_v3 }
   0xe   : > { %s505_s12 = smov (!%p215_p4, %s426_s12), 1 }
   0xf   : > { %s379_s18 = sshll.u32 %s505_s12, 1  ;;  %s384_s22 = sshll.u32 %s505_s12, 3 }
  0x10   : > { %s231_s21 = scalar_lea.vmem %s497_s1, %s379_s18  ;;  %s222_s25 = scalar_lea.vmem %s496_s0, %s384_s22 }
  0x11   : > { %v244_v6 = vld [vmem:[%s231_s21] sm:$0x3]  ;;  %s241_s28 = scalar_lea.vmem %s499_s3, %s384_s22 }
  0x12   : > { %v250_v7 = vrot.slane %v244_v6, %v249_v4  ;;  %v254_v8 = vrot.slane %v244_v6, %v253_v5  ;;  %v243_v12 = vld [vmem:[%s222_s25] sm:$0xff] }
  0x87   : > { %v260_v9 = vpop.permute.xlu0 %259 }
  0x88   : > { %v262_v10 = vmul.f32 %v260_v9, %v250_v7  ;;  %v263_v11 = vmul.f32 %v260_v9, %v254_v8 }
  0x8a   : > { %v266_v13 = vcombine.low %v262_v10, %v263_v11 }
  0x8c   : > { %v268_v14 = vadd.f32 %v266_v13, %v243_v12 }
  0x8e   : > { %269 = vst [vmem:[%s241_s28] sm:$0xff] %v268_v14 }
  0x8f PF: > { %s13_s14 = sadd.s32 1, %s434_s14   ;;  %s500_s12 = smov %s430_s13 }
  0x90   : > { %p10_p5 = scmp.ge.s32.totalorder %s13_s14, 4   ;;  %s501_s13 = smov %s503_s15 }
  0x92   :  { %12 = sbr.rel (!%p10_p5) target bundleno = 2 (0x2), region = 65 }

</bundles_post_ra>
